<compile_context>
chip_gen: v7x
topology: tpu7x:2x2x1
jax: 0.10.0
libtpu: 0.0.40
codegen_flags: <defaults>
</compile_context>

<pallas_src>
import functools

import jax
import jax.numpy as jnp
from jax.experimental import pallas as pl
from jax.experimental.pallas import tpu as pltpu


def _round_up(x, m):
    return ((x + m - 1) // m) * m


def _largest_tile(n_pad, cap):
    """Largest 128-multiple tile <= cap that divides n_pad."""
    for t in (512, 384, 256, 128):
        if t <= cap and n_pad % t == 0:
            return t
    return 128


def _vmem_budget_bytes():
    """Per-generation scoped-VMEM budget (leave headroom for compiler scratch)."""
    try:
        cap = pltpu.get_tpu_info().vmem_capacity_bytes
    except Exception:
        cap = 64 * 1024 * 1024  # conservative: assume v7x (64 MiB per TC)
    return int(min(cap * 3 // 4, 100 * 1024 * 1024))


# ----------------------------- Pallas kernels --------------------------------
def _layer1_kernel(a_ref, xw1_ref, b1_ref, w2_ref, o_ref, acc_ref, *,
                   tk, xw1_resident):
    """HW2[i] = relu(sum_k A[i,k] @ XW1[k] + b1) @ W2 for one row block."""
    k = pl.program_id(1)

    @pl.when(k == 0)
    def _():
        acc_ref[...] = jnp.zeros_like(acc_ref)

    if xw1_resident:
        # XW1 lives whole in VMEM; slice the k-th row block (start is 128-aligned).
        start = pl.multiple_of(k * tk, 128)
        xw1_blk = xw1_ref[pl.ds(start, tk), :]
    else:
        xw1_blk = xw1_ref[...]

    acc_ref[...] += jnp.dot(a_ref[...], xw1_blk,
                            preferred_element_type=jnp.float32)

    @pl.when(k == pl.num_programs(1) - 1)
    def _():
        # NOTE: for padded rows (>= n) acc == 0, so h == relu(b1) and the stored
        # row is relu(b1) @ W2 (generally nonzero).  This is harmless because
        # A_pad's columns >= n are zero in layer 2 and the wrapper slices [:n].
        h = jnp.maximum(acc_ref[...] + b1_ref[...], 0.0)          # [tm, Hpad] f32
        # Fused second projection (K = Hpad = 128, full MXU width).
        o_ref[...] = jnp.dot(h.astype(w2_ref.dtype), w2_ref[...],
                             preferred_element_type=jnp.float32).astype(o_ref.dtype)


def _layer2_kernel(a_ref, y_ref, b2_ref, o_ref, *, tk, y_resident):
    """O[i] = sum_k A[i,k] @ HW2[k] + b2, accumulated directly into the f32 out."""
    k = pl.program_id(1)

    @pl.when(k == 0)
    def _():
        o_ref[...] = jnp.zeros_like(o_ref)

    if y_resident:
        start = pl.multiple_of(k * tk, 128)
        y_blk = y_ref[pl.ds(start, tk), :]
    else:
        y_blk = y_ref[...]

    o_ref[...] += jnp.dot(a_ref[...], y_blk, preferred_element_type=jnp.float32)

    @pl.when(k == pl.num_programs(1) - 1)
    def _():
        o_ref[...] += b2_ref[...]


# ------------------------------ JAX glue -------------------------------------
def build_normalized_adjacency(edge_index, num_nodes, *, n_pad=None,
                               dtype=jnp.float32):
    """Dense, zero-padded D^-1/2 (A + I) D^-1/2 matching torch_geometric gcn_norm.

    Built directly at the target dtype/padding so no f32 (n_pad, n_pad)
    intermediate is materialized."""
    if n_pad is None:
        n_pad = num_nodes
    src, dst = edge_index[0], edge_index[1]
    loop = jnp.arange(num_nodes, dtype=edge_index.dtype)
    src = jnp.concatenate([src, loop])
    dst = jnp.concatenate([dst, loop])
    w = jnp.ones(src.shape[0], dtype=jnp.float32)

    deg = jnp.zeros((num_nodes,), jnp.float32).at[dst].add(w)
    deg_inv_sqrt = jnp.where(deg > 0, jax.lax.rsqrt(deg), 0.0)
    norm = (deg_inv_sqrt[src] * w * deg_inv_sqrt[dst]).astype(dtype)

    # out[i] = sum over edges (j -> i) of norm * x[j]  =>  A_hat[i, j]
    return jnp.zeros((n_pad, n_pad), dtype).at[dst, src].add(norm)


def anomaly_gcn_pallas(x, edge_index, w1, b1, w2, b2, *, tm=None, tk=None):
    """Forward pass of the 2-layer GCN:
       relu(A_hat @ (X @ W1) + b1) -> A_hat @ (. @ W2) + b2."""
    n, _ = x.shape
    hidden = w1.shape[1]
    cout = w2.shape[1]

    n_pad = _round_up(n, 128)
    h_pad = _round_up(hidden, 128)     # lane-dense hidden width
    o_pad = _round_up(cout, 128)       # lane-dense output width (unmasked vst)

    # --- tile selection (review: grow tiles to 256-512; keep >=2 row blocks) ---
    if tk is None:
        tk = _largest_tile(n_pad, 512)
    if tm is None:
        tm_cap = min(512, n_pad // 2) if n_pad >= 256 else n_pad
        tm = _largest_tile(n_pad, max(tm_cap, 128))

    # --- VMEM budgeting: decide whether XW1 / HW2 are fully VMEM-resident ---
    budget = _vmem_budget_bytes()
    a_tiles = 2 * tm * tk * 2                                  # bf16, double-buffered
    l1_fixed = (tm * h_pad * 4 + 2 * tm * o_pad * 2
                + 2 * h_pad * o_pad * 2 + 2 * 8 * h_pad * 4)
    l2_fixed = 2 * tm * o_pad * 4 + 2 * 8 * o_pad * 4
    l1_resident = a_tiles + l1_fixed + 2 * n_pad * h_pad * 2 <= (budget * 4) // 5
    l2_resident = a_tiles + l2_fixed + 2 * n_pad * o_pad * 2 <= (budget * 4) // 5

    # --- host-side prep (all padding is zero-fill, so valid region is exact) ---
    a_pad = build_normalized_adjacency(edge_index, n, n_pad=n_pad,
                                       dtype=jnp.bfloat16)      # MXU operand

    # Tiny K=Cin projection hoisted out of the kernel (K=4 would waste MXU depth).
    xw1 = jnp.dot(x, w1, preferred_element_type=jnp.float32)    # [n, hidden]
    xw1_pad = jnp.zeros((n_pad, h_pad), jnp.bfloat16).at[:n, :hidden].set(
        xw1.astype(jnp.bfloat16))

    b1_pad = jnp.zeros((1, h_pad), jnp.float32).at[:, :hidden].set(b1.reshape(1, -1))
    w2_pad = jnp.zeros((h_pad, o_pad), jnp.bfloat16).at[:hidden, :cout].set(
        w2.astype(jnp.bfloat16))
    b2_pad = jnp.zeros((1, o_pad), jnp.float32).at[:, :cout].set(b2.reshape(1, -1))

    grid = (n_pad // tm, n_pad // tk)   # (row blocks: parallel, reduction: arbitrary)
    cparams = pltpu.CompilerParams(
        dimension_semantics=("parallel", "arbitrary"),
        vmem_limit_bytes=budget,        # ~48 MiB on v7x, ~96 MiB on v5e/v6e
    )

    if l1_resident:
        xw1_spec = pl.BlockSpec((n_pad, h_pad), lambda i, k: (0, 0))   # fetched once
    else:
        xw1_spec = pl.BlockSpec((tk, h_pad), lambda i, k: (k, 0))      # per-k stream

    # ---- layer 1 (+ fused W2 projection): HW2 = relu(A @ XW1 + b1) @ W2 ----
    hw2 = pl.pallas_call(
        functools.partial(_layer1_kernel, tk=tk, xw1_resident=l1_resident),
        out_shape=jax.ShapeDtypeStruct((n_pad, o_pad), jnp.bfloat16),
        grid_spec=pltpu.PrefetchScalarGridSpec(
            num_scalar_prefetch=0,
            grid=grid,
            in_specs=[
                pl.BlockSpec((tm, tk), lambda i, k: (i, k)),       # A_hat tile
                xw1_spec,                                          # XW1
                pl.BlockSpec((1, h_pad), lambda i, k: (0, 0)),     # b1
                pl.BlockSpec((h_pad, o_pad), lambda i, k: (0, 0)), # W2 (resident)
            ],
            out_specs=pl.BlockSpec((tm, o_pad), lambda i, k: (i, 0)),
            scratch_shapes=[pltpu.VMEM((tm, h_pad), jnp.float32)],
        ),
        compiler_params=cparams,
    )(a_pad, xw1_pad, b1_pad, w2_pad)

    if l2_resident:
        hw2_spec = pl.BlockSpec((n_pad, o_pad), lambda i, k: (0, 0))   # fetched once
    else:
        hw2_spec = pl.BlockSpec((tk, o_pad), lambda i, k: (k, 0))      # per-k stream

    # ---- layer 2: O = A @ HW2 + b2 (accumulate directly into f32 output) ----
    out = pl.pallas_call(
        functools.partial(_layer2_kernel, tk=tk, y_resident=l2_resident),
        out_shape=jax.ShapeDtypeStruct((n_pad, o_pad), jnp.float32),
        grid_spec=pltpu.PrefetchScalarGridSpec(
            num_scalar_prefetch=0,
            grid=grid,
            in_specs=[
                pl.BlockSpec((tm, tk), lambda i, k: (i, k)),       # A_hat tile
                hw2_spec,                                          # HW2
                pl.BlockSpec((1, o_pad), lambda i, k: (0, 0)),     # b2
            ],
            out_specs=pl.BlockSpec((tm, o_pad), lambda i, k: (i, 0)),
        ),
        compiler_params=cparams,
    )(a_pad, hw2, b2_pad)

    return out[:n, :cout]


def glorot(key, shape):
    fan_in, fan_out = shape
    limit = jnp.sqrt(6.0 / (fan_in + fan_out))
    return jax.random.uniform(key, shape, jnp.float32, -limit, limit)


def reference_forward(x, edge_index, w1, b1, w2, b2):
    a_hat = build_normalized_adjacency(edge_index, x.shape[0], dtype=jnp.float32)
    h = jnp.maximum(a_hat @ (x @ w1) + b1, 0.0)
    return a_hat @ (h @ w2) + b2


# ------------------------------- main -----------------------------------------
if __name__ == "__main__":
    # Small, deterministic problem: 16-node bidirectional ring graph.
    N = 16
    in_channels, hidden_channels, out_channels = 4, 32, 8

    key = jax.random.PRNGKey(0)
    kx, kw1, kw2 = jax.random.split(key, 3)

    x = jax.random.normal(kx, (N, in_channels), jnp.float32)

    idx = jnp.arange(N, dtype=jnp.int32)
    src = jnp.concatenate([idx, (idx + 1) % N])
    dst = jnp.concatenate([(idx + 1) % N, idx])
    edge_index = jnp.stack([src, dst], axis=0)          # [2, E], E = 2N

    # GCNConv params: glorot weights, zero bias (PyG defaults), init'd in-script.
    w1 = glorot(kw1, (in_channels, hidden_channels))
    b1 = jnp.zeros((hidden_channels,), jnp.float32)
    w2 = glorot(kw2, (hidden_channels, out_channels))
    b2 = jnp.zeros((out_channels,), jnp.float32)

    out = anomaly_gcn_pallas(x, edge_index, w1, b1, w2, b2)
    out = jax.block_until_ready(out)

    ref = reference_forward(x, edge_index, w1, b1, w2, b2)
    assert out.shape == (N, out_channels)
    max_err = float(jnp.max(jnp.abs(out - ref)))
    # bf16 MXU operands with f32 accumulation -> ~1e-2-level tolerance.
    assert jnp.allclose(out, ref, atol=2e-2, rtol=2e-2), (
        f"mismatch vs JAX reference (max abs err {max_err})")

    print("KERNEL_OK")
</pallas_src>

<mosaic_0001>
module attributes {stable_mosaic.version = 11 : i64} {
  func.func @_layer1_kernel(%arg0: i32, %arg1: i32, %arg2: memref<128x128xbf16, #tpu.memory_space<vmem>>, %arg3: memref<128x128xbf16, #tpu.memory_space<vmem>>, %arg4: memref<1x128xf32, #tpu.memory_space<vmem>>, %arg5: memref<128x128xbf16, #tpu.memory_space<vmem>>, %arg6: memref<128x128xbf16, #tpu.memory_space<vmem>>, %arg7: memref<128x128xf32, #tpu.memory_space<vmem>>) attributes {dimension_semantics = [#tpu.dimension_semantics<parallel>, #tpu.dimension_semantics<arbitrary>], iteration_bounds = array<i64: 1, 1>, scalar_prefetch = 0 : i64, scratch_operands = 1 : i64, tpu.core_type = #tpu.core_type<tc>, window_params = [{transform_indices = @transform_0, window_bounds = array<i64: 128, 128>}, {pipeline_mode = #tpu.pipeline_mode<synchronous>, transform_indices = @transform_1, window_bounds = array<i64: 128, 128>}, {pipeline_mode = #tpu.pipeline_mode<synchronous>, transform_indices = @transform_2, window_bounds = array<i64: 1, 128>}, {pipeline_mode = #tpu.pipeline_mode<synchronous>, transform_indices = @transform_3, window_bounds = array<i64: 128, 128>}, {transform_indices = @transform_4, window_bounds = array<i64: 128, 128>}]} {
    %c0_i32 = arith.constant 0 : i32
    %0 = arith.cmpi eq, %arg1, %c0_i32 : i32
    %1 = arith.extui %0 : i1 to i32
    %c0_i32_0 = arith.constant 0 : i32
    %2 = arith.cmpi ne, %1, %c0_i32_0 : i32
    scf.if %2 {
      %cst_9 = arith.constant 0.000000e+00 : f32
      %15 = vector.broadcast %cst_9 : f32 to vector<128x128xf32>
      %c0_10 = arith.constant 0 : index
      %c0_11 = arith.constant 0 : index
      %16 = vector.load %arg7[%c0_10, %c0_11] : memref<128x128xf32, #tpu.memory_space<vmem>>, vector<128x128xf32>
      tpu.vector_store %arg7[%c0_10, %c0_11], %15 {strides = array<i32>} : memref<128x128xf32, #tpu.memory_space<vmem>>, vector<128x128xf32>,
    } else {
    }
    %c128_i32 = arith.constant 128 : i32
    %3 = arith.muli %arg1, %c128_i32 : i32
    %4 = tpu.assume_multiple %3, 128 : i32
    %5 = arith.index_cast %4 : i32 to index
    %c0 = arith.constant 0 : index
    %6 = vector.load %arg3[%5, %c0] : memref<128x128xbf16, #tpu.memory_space<vmem>>, vector<128x128xbf16>
    %c0_1 = arith.constant 0 : index
    %c0_2 = arith.constant 0 : index
    %7 = vector.load %arg7[%c0_1, %c0_2] : memref<128x128xf32, #tpu.memory_space<vmem>>, vector<128x128xf32>
    %c0_3 = arith.constant 0 : index
    %c0_4 = arith.constant 0 : index
    %8 = vector.load %arg2[%c0_3, %c0_4] : memref<128x128xbf16, #tpu.memory_space<vmem>>, vector<128x128xbf16>
    %cst = arith.constant dense<0.000000e+00> : vector<128x128xf32>
    %9 = tpu.matmul %8, %6, %cst {dimension_numbers = #tpu.dot_dimension_numbers<[1], [0], [0], [1], [0, 0, 1, 1], [], []>} : vector<128x128xbf16>, vector<128x128xbf16>, vector<128x128xf32> -> vector<128x128xf32>
    %10 = arith.addf %7, %9 : vector<128x128xf32>
    %c0_5 = arith.constant 0 : index
    %c0_6 = arith.constant 0 : index
    %11 = vector.load %arg7[%c0_5, %c0_6] : memref<128x128xf32, #tpu.memory_space<vmem>>, vector<128x128xf32>
    tpu.vector_store %arg7[%c0_5, %c0_6], %10 {strides = array<i32>} : memref<128x128xf32, #tpu.memory_space<vmem>>, vector<128x128xf32>,
    %c0_i32_7 = arith.constant 0 : i32
    %12 = arith.cmpi eq, %arg1, %c0_i32_7 : i32
    %13 = arith.extui %12 : i1 to i32
    %c0_i32_8 = arith.constant 0 : i32
    %14 = arith.cmpi ne, %13, %c0_i32_8 : i32
    scf.if %14 {
      %c0_9 = arith.constant 0 : index
      %c0_10 = arith.constant 0 : index
      %15 = vector.load %arg7[%c0_9, %c0_10] : memref<128x128xf32, #tpu.memory_space<vmem>>, vector<128x128xf32>
      %c0_11 = arith.constant 0 : index
      %c0_12 = arith.constant 0 : index
      %16 = vector.load %arg4[%c0_11, %c0_12] : memref<1x128xf32, #tpu.memory_space<vmem>>, vector<1x128xf32>
      %17 = vector.broadcast %16 : vector<1x128xf32> to vector<128x128xf32>
      %18 = arith.addf %15, %17 : vector<128x128xf32>
      %cst_13 = arith.constant 0.000000e+00 : f32
      %19 = vector.broadcast %cst_13 : f32 to vector<128x128xf32>
      %20 = arith.maximumf %18, %19 : vector<128x128xf32>
      %21 = arith.truncf %20 : vector<128x128xf32> to vector<128x128xbf16>
      %c0_14 = arith.constant 0 : index
      %c0_15 = arith.constant 0 : index
      %22 = vector.load %arg5[%c0_14, %c0_15] : memref<128x128xbf16, #tpu.memory_space<vmem>>, vector<128x128xbf16>
      %cst_16 = arith.constant dense<0.000000e+00> : vector<128x128xf32>
      %23 = tpu.matmul %21, %22, %cst_16 {dimension_numbers = #tpu.dot_dimension_numbers<[1], [0], [0], [1], [0, 0, 1, 1], [], []>} : vector<128x128xbf16>, vector<128x128xbf16>, vector<128x128xf32> -> vector<128x128xf32>
      %24 = arith.truncf %23 : vector<128x128xf32> to vector<128x128xbf16>
      %c0_17 = arith.constant 0 : index
      %c0_18 = arith.constant 0 : index
      %25 = vector.load %arg6[%c0_17, %c0_18] : memref<128x128xbf16, #tpu.memory_space<vmem>>, vector<128x128xbf16>
      tpu.vector_store %arg6[%c0_17, %c0_18], %24 {strides = array<i32>} : memref<128x128xbf16, #tpu.memory_space<vmem>>, vector<128x128xbf16>,
    } else {
    }
    return
  }
  func.func @transform_0(%arg0: i32, %arg1: i32) -> (i32, i32) {
    %c0_i32 = arith.constant 0 : i32
    return %arg0, %arg1 : i32, i32
  }
  func.func @transform_1(%arg0: i32, %arg1: i32) -> (i32, i32) {
    %c0_i32 = arith.constant 0 : i32
    %c0_i32_0 = arith.constant 0 : i32
    %c0_i32_1 = arith.constant 0 : i32
    return %c0_i32, %c0_i32_0 : i32, i32
  }
  func.func @transform_2(%arg0: i32, %arg1: i32) -> (i32, i32) {
    %c0_i32 = arith.constant 0 : i32
    %c0_i32_0 = arith.constant 0 : i32
    %c0_i32_1 = arith.constant 0 : i32
    return %c0_i32, %c0_i32_0 : i32, i32
  }
  func.func @transform_3(%arg0: i32, %arg1: i32) -> (i32, i32) {
    %c0_i32 = arith.constant 0 : i32
    %c0_i32_0 = arith.constant 0 : i32
    %c0_i32_1 = arith.constant 0 : i32
    return %c0_i32, %c0_i32_0 : i32, i32
  }
  func.func @transform_4(%arg0: i32, %arg1: i32) -> (i32, i32) {
    %c0_i32 = arith.constant 0 : i32
    %c0_i32_0 = arith.constant 0 : i32
    return %arg0, %c0_i32 : i32, i32
  }
}

</mosaic_0001>

<bundles_post_ra>
// kernel: tpu_custom_call.1
= control target key start
LH: loop header
LB: loop body
LE: loop exit
PB: predicated region body
PF: predicated region fallthrough
CT: control target
= control target key end

     0   :  { %9 = vsyncpa [#allocation4], 0  ;;  %s1110_s0 = inlined_call_operand.hbm [shape: bf16[128,128], index: 0, kind: input, shape index: {}]   ;;  %s1111_s1 = inlined_call_operand.hbm [shape: bf16[128,128], index: 1, kind: input, shape index: {}]   ;;  %s1112_s2 = inlined_call_operand.vmem [shape: f32[1,128], index: 2, kind: input, shape index: {}]   ;;  %s1113_s3 = inlined_call_operand.hbm [shape: bf16[128,128], index: 3, kind: input, shape index: {}]   ;;  %s1114_s4 = inlined_call_operand.hbm [shape: bf16[128,128], index: 4, kind: output, shape index: {}]  }
   0x1   :  { %10 = vsyncpa [#allocation7], 0 }
   0x2   :  { %11 = vsyncpa [#allocation5], 0  ;;  %s1009_s15 = smov [#allocation6]   ;;  %s1010_s17 = smov [#allocation3]  }
   0x3   :  { %s29_s16 = sshll.u32 %s1009_s15, 4  ;;  %s17_s18 = sshll.u32 %s1010_s17, 4  ;;  %s30_s16 = int_to_ptr.vmem [resolvable:$true] %s29_s16  ;;  %s1040_s18 = int_to_ptr.vmem [resolvable:$true] %s17_s18 }
   0x4   :  { %s915_s21 = scalar_lea.hbm %s1111_s1, 1024 }
   0x5   :  { %p916_p0 = scmp.ne.s32.totalorder %s1111_s1, %s915_s21  ;;  %p919_p1 = scmp.lt.u32.totalorder %s915_s21, %s1111_s1 }
   0x7   :  { %p921_p2 = pnand %p919_p1, %p916_p0 }
   0x9   :  { %924 = shalt.err (!%p921_p2)
}
   0xa   :  { %s925_s26 = scalar_lea.vmem %s30_s16, 1024  ;;  %p930_p4 = scmp.lt.s32.totalorder %s30_s16, %s30_s16 }
   0xb   :  { %p926_p3 = scmp.ne.s32.totalorder %s30_s16, %s925_s26  ;;  %p931_p5 = scmp.lt.s32.totalorder %s925_s26, %s925_s26 }
   0xd   :  { %p932_p6 = por %p931_p5, %p930_p4 }
   0xf   :  { %p933_p7 = pnand %p932_p6, %p926_p3 }
  0x11   :  { %936 = shalt.err (!%p933_p7)
}
  0x12   :  { %s1011_s27 = smov 64   ;;  %s1012_s28 = smov 4  }
  0x13   :  { %35 = dma.hbm_to_vmem [thread:$0]  %s1111_s1, 1024, %s30_s16, [#allocation7], %s1011_s27, %s1011_s27, %s1012_s28  }
  0x14   :  { %s937_s7 = scalar_lea.hbm %s1110_s0, 1024 }
  0x15   :  { %p938_p8 = scmp.ne.s32.totalorder %s1110_s0, %s937_s7  ;;  %p941_p9 = scmp.lt.u32.totalorder %s937_s7, %s1110_s0 }
  0x17   :  { %p943_p10 = pnand %p941_p9, %p938_p8 }
  0x19   :  { %946 = shalt.err (!%p943_p10)
}
  0x1a   :  { %s947_s12 = scalar_lea.vmem %s1040_s18, 1024  ;;  %p952_p12 = scmp.lt.s32.totalorder %s1040_s18, %s1040_s18 }
  0x1b   :  { %p948_p11 = scmp.ne.s32.totalorder %s1040_s18, %s947_s12  ;;  %p953_p13 = scmp.lt.s32.totalorder %s947_s12, %s947_s12 }
  0x1d   :  { %p954_p0 = por %p953_p13, %p952_p12 }
  0x1f   :  { %p955_p1 = pnand %p954_p0, %p948_p11 }
  0x21   :  { %958 = shalt.err (!%p955_p1)
}
  0x22   :  { %23 = dma.hbm_to_vmem [thread:$0]  %s1110_s0, 1024, %s1040_s18, [#allocation4], %s1011_s27, %s1011_s27, %s1012_s28  }
  0x23   :  { %s1013_s14 = smov [#allocation8]   ;;  %s959_s19 = scalar_lea.hbm %s1113_s3, 1024 }
  0x24   :  { %s43_s15 = sshll.u32 %s1013_s14, 4  ;;  %p960_p2 = scmp.ne.s32.totalorder %s1113_s3, %s959_s19  ;;  %s44_s15 = int_to_ptr.vmem [resolvable:$true] %s43_s15 }
  0x25   :  { %p963_p3 = scmp.lt.u32.totalorder %s959_s19, %s1113_s3 }
  0x27   :  { %p965_p4 = pnand %p963_p3, %p960_p2 }
  0x29   :  { %968 = shalt.err (!%p965_p4)
}
  0x2a   :  { %s969_s24 = scalar_lea.vmem %s44_s15, 1024  ;;  %p974_p6 = scmp.lt.s32.totalorder %s44_s15, %s44_s15 }
  0x2b   :  { %p970_p5 = scmp.ne.s32.totalorder %s44_s15, %s969_s24  ;;  %p975_p7 = scmp.lt.s32.totalorder %s969_s24, %s969_s24 }
  0x2d   :  { %p976_p8 = por %p975_p7, %p974_p6 }
  0x2f   :  { %p977_p9 = pnand %p976_p8, %p970_p5 }
  0x31   :  { %980 = shalt.err (!%p977_p9)
}
  0x32   :  { %49 = dma.hbm_to_vmem [thread:$0]  %s1113_s3, 1024, %s44_s15, [#allocation7], %s1011_s27, %s1011_s27, %s1012_s28  }
  0x33   :  { %1003 = dma.done.wait [#allocation4], 1024  }
  0x34   :  { %1004 = vsyncadd [#allocation4], 4294966272 }
  0x35   :  { %1005 = dma.done.wait [#allocation7], 2048  }
  0x36   :  { %1006 = vsyncadd [#allocation7], 4294965248  ;;  %v891_v0 = vld [vmem:[#allocation6] sm:$0xff]   ;;  %v892_v1 = vld [vmem:[#allocation6 + $0x8] sm:$0xff]  }
  0x37   :  { %821 = vmatprep.subr.bf16.mxu0 %v891_v0  ;;  %v893_v2 = vld [vmem:[#allocation6 + $0x10] sm:$0xff]   ;;  %v894_v3 = vld [vmem:[#allocation6 + $0x18] sm:$0xff]   ;;  %v899_v4 = vld [vmem:[#allocation3] sm:$0xff]  }
  0x38   :  { %822 = vmatpush3.bf16.msra.mxu0 %v891_v0  ;;  %837 = vmatprep.mubr.bf16.mxu0 %v899_v4  ;;  %v895_v5 = vld [vmem:[#allocation6 + $0x20] sm:$0xff]   ;;  %v896_v6 = vld [vmem:[#allocation6 + $0x28] sm:$0xff]   ;;  %v897_v9 = vld [vmem:[#allocation6 + $0x30] sm:$0xff]  }
  0x39   :  { %823 = vmatprep.subr.bf16.mxu0 %v892_v1  ;;  %v907_v7 = vld [vmem:[#allocation8] sm:$0xff]   ;;  %v908_v8 = vld [vmem:[#allocation8 + $0x8] sm:$0xff]   ;;  %v909_v10 = vld [vmem:[#allocation8 + $0x10] sm:$0xff]  }
  0x3a   :  { %853 = vmatprep.subr.bf16.mxu1 %v907_v7  ;;  %v898_v11 = vld [vmem:[#allocation6 + $0x38] sm:$0xff]   ;;  %v911_v13 = vld [vmem:[#allocation8 + $0x20] sm:$0xff]   ;;  %v900_v14 = vld [vmem:[#allocation3 + $0x8] sm:$0xff]  }
  0x3b   :  { %854 = vmatpush3.bf16.msra.mxu1 %v907_v7  ;;  %v910_v12 = vld [vmem:[#allocation8 + $0x18] sm:$0xff]   ;;  %v901_v15 = vld [vmem:[#allocation3 + $0x10] sm:$0xff]   ;;  %v912_v16 = vld [vmem:[#allocation8 + $0x28] sm:$0xff]  }
  0x3c   :  { %824 = vmatpush3.bf16.msra.mxu0 %v892_v1  ;;  %855 = vmatprep.subr.bf16.mxu1 %v908_v8  ;;  %v902_v17 = vld [vmem:[#allocation3 + $0x18] sm:$0xff]   ;;  %v903_v18 = vld [vmem:[#allocation3 + $0x20] sm:$0xff]   ;;  %v904_v19 = vld [vmem:[#allocation3 + $0x28] sm:$0xff]  }
  0x3d   :  { %825 = vmatprep.subr.bf16.mxu0 %v893_v2  ;;  %v905_v20 = vld [vmem:[#allocation3 + $0x30] sm:$0xff]   ;;  %v906_v21 = vld [vmem:[#allocation3 + $0x38] sm:$0xff]   ;;  %v701_v24 = vld [vmem:[%s1112_s2] ss:$0 sm:$0xff]  ;;  %s1014_s2 = smov [#allocation9]  }
  0x3e   :  { %v913_v22 = vld [vmem:[#allocation8 + $0x30] sm:$0xff]   ;;  %v914_v23 = vld [vmem:[#allocation8 + $0x38] sm:$0xff]   ;;  %s670_s26 = sshll.u32 %s1014_s2, 4  ;;  %s671_s26 = int_to_ptr.vmem [resolvable:$true] %s670_s26 }
  0x3f   :  { %856 = vmatpush3.bf16.msra.mxu1 %v908_v8  ;;  %s981_s29 = scalar_lea.vmem %s671_s26, 1024  ;;  %p986_p11 = scmp.lt.s32.totalorder %s671_s26, %s671_s26 }
  0x40   :  { %826 = vmatpush3.bf16.msra.mxu0 %v893_v2  ;;  %857 = vmatprep.subr.bf16.mxu1 %v909_v10  ;;  %p982_p10 = scmp.ne.s32.totalorder %s671_s26, %s981_s29  ;;  %p987_p12 = scmp.lt.s32.totalorder %s981_s29, %s981_s29 }
  0x41   :  { %827 = vmatprep.subr.bf16.mxu0 %v894_v3 }
  0x42   :  { %p988_p13 = por %p987_p12, %p986_p11 }
  0x43   :  { %858 = vmatpush3.bf16.msra.mxu1 %v909_v10 }
  0x44   :  { %828 = vmatpush3.bf16.msra.mxu0 %v894_v3  ;;  %859 = vmatprep.subr.bf16.mxu1 %v910_v12  ;;  %p989_p0 = pnand %p988_p13, %p982_p10 }
  0x45   :  { %829 = vmatprep.subr.bf16.mxu0 %v895_v5 }
  0x47   :  { %860 = vmatpush3.bf16.msra.mxu1 %v910_v12 }
  0x48   :  { %830 = vmatpush3.bf16.msra.mxu0 %v895_v5  ;;  %861 = vmatprep.subr.bf16.mxu1 %v911_v13 }
  0x49   :  { %831 = vmatprep.subr.bf16.mxu0 %v896_v6 }
  0x4b   :  { %862 = vmatpush3.bf16.msra.mxu1 %v911_v13 }
  0x4c   :  { %832 = vmatpush3.bf16.msra.mxu0 %v896_v6  ;;  %863 = vmatprep.subr.bf16.mxu1 %v912_v16 }
  0x4d   :  { %833 = vmatprep.subr.bf16.mxu0 %v897_v9 }
  0x4f   :  { %864 = vmatpush3.bf16.msra.mxu1 %v912_v16 }
  0x50   :  { %834 = vmatpush3.bf16.msra.mxu0 %v897_v9  ;;  %865 = vmatprep.subr.bf16.mxu1 %v913_v22 }
  0x51   :  { %835 = vmatprep.subr.bf16.mxu0 %v898_v11 }
  0x53   :  { %866 = vmatpush3.bf16.msra.mxu1 %v913_v22 }
  0x54   :  { %836 = vmatpush3.bf16.msra.mxu0 %v898_v11  ;;  %867 = vmatprep.subr.bf16.mxu1 %v914_v23 }
  0x57   :  { %838 = vmatmul.mubr.bf16.vlgmr.msra.gmra.mrb[0].mxu0 %v900_v14  ;;  %868 = vmatpush3.bf16.msra.mxu1 %v914_v23 }
  0x58   :  { %841 = vmatprep.mubr.bf16.mxu0 %v901_v15 }
  0x5f   :  { %842 = vmatmul.mubr.bf16.gmra.mrb[4].mxu0 %v902_v17 }
  0x60   :  { %845 = vmatprep.mubr.bf16.mxu0 %v903_v18 }
  0x67   :  { %846 = vmatmul.mubr.bf16.gmra.mrb[8].mxu0 %v904_v19 }
  0x68   :  { %849 = vmatprep.mubr.bf16.mxu0 %v905_v20 }
  0x6f   :  { %850 = vmatmul.mubr.bf16.gmra.mrb[12].mxu0 %v906_v21 }
 0x12a   :  { %v839_v25 = vpop.f32.mrb[0].mxu0 }
 0x12b   :  { %v386_v26 = vadd.f32 %v839_v25, %v701_v24  ;;  %v263_v27 = vpop.f32.mrb[1].mxu0 }
 0x12c   :  { %v384_v28 = vadd.f32 %v701_v24, %v263_v27  ;;  %v840_v29 = vpop.f32.mrb[2].mxu0 }
 0x12d   :  { %v387_v30 = vadd.f32 %v840_v29, %v701_v24  ;;  %v266_v31 = vpop.f32.mrb[3].mxu0  ;;  %v402_v33 = vmax.f32 %v386_v26, 0.0 }
 0x12e   :  { %v385_v32 = vadd.f32 %v701_v24, %v266_v31  ;;  %v400_v35 = vmax.f32 %v384_v28, 0.0 }
 0x12f   :  { %v403_v34 = vmax.f32 %v387_v30, 0.0 }
 0x130   :  { %v401_v36 = vmax.f32 %v385_v32, 0.0 }
 0x131   :  { %v417_v37 = vpack.c.bf16 %v403_v34, %v402_v33 }
 0x132   :  { %v843_v38 = vpop.f32.mrb[4].mxu0  ;;  %v416_v39 = vpack.c.bf16 %v401_v36, %v400_v35 }
 0x133   :  { %v390_v40 = vadd.f32 %v843_v38, %v701_v24  ;;  %v279_v41 = vpop.f32.mrb[5].mxu0 }
 0x134   :  { %v388_v42 = vadd.f32 %v701_v24, %v279_v41  ;;  %v844_v43 = vpop.f32.mrb[6].mxu0  ;;  %869 = vmatprep.mubr.bf16.mxu1 %v416_v39 }
 0x135   :  { %v391_v44 = vadd.f32 %v844_v43, %v701_v24  ;;  %v282_v45 = vpop.f32.mrb[7].mxu0  ;;  %870 = vmatmul.mubr.bf16.vlgmr.msra.gmra.mrb[0].mxu1 %v417_v37  ;;  %v406_v47 = vmax.f32 %v390_v40, 0.0 }
 0x136   :  { %v389_v46 = vadd.f32 %v701_v24, %v282_v45  ;;  %v404_v49 = vmax.f32 %v388_v42, 0.0 }
 0x137   :  { %v407_v48 = vmax.f32 %v391_v44, 0.0 }
 0x138   :  { %v405_v50 = vmax.f32 %v389_v46, 0.0 }
 0x139   :  { %v419_v51 = vpack.c.bf16 %v407_v48, %v406_v47 }
 0x13a   :  { %v418_v52 = vpack.c.bf16 %v405_v50, %v404_v49  ;;  %v847_v53 = vpop.f32.mrb[8].mxu0 }
 0x13b   :  { %v394_v54 = vadd.f32 %v847_v53, %v701_v24  ;;  %v295_v55 = vpop.f32.mrb[9].mxu0 }
 0x13c   :  { %v392_v56 = vadd.f32 %v701_v24, %v295_v55  ;;  %v848_v57 = vpop.f32.mrb[10].mxu0  ;;  %873 = vmatprep.mubr.bf16.mxu1 %v418_v52 }
 0x13d   :  { %v395_v58 = vadd.f32 %v848_v57, %v701_v24  ;;  %v298_v59 = vpop.f32.mrb[11].mxu0  ;;  %874 = vmatmul.mubr.bf16.gmra.mrb[4].mxu1 %v419_v51  ;;  %v410_v61 = vmax.f32 %v394_v54, 0.0 }
 0x13e   :  { %v393_v60 = vadd.f32 %v701_v24, %v298_v59  ;;  %v408_v63 = vmax.f32 %v392_v56, 0.0 }
 0x13f   :  { %v411_v62 = vmax.f32 %v395_v58, 0.0 }
 0x140   :  { %v409_v0 = vmax.f32 %v393_v60, 0.0 }
 0x141   :  { %v421_v1 = vpack.c.bf16 %v411_v62, %v410_v61 }
 0x142   :  { %v420_v2 = vpack.c.bf16 %v409_v0, %v408_v63  ;;  %v851_v3 = vpop.f32.mrb[12].mxu0 }
 0x143   :  { %v398_v4 = vadd.f32 %v851_v3, %v701_v24  ;;  %v311_v5 = vpop.f32.mrb[13].mxu0 }
 0x144   :  { %v396_v6 = vadd.f32 %v701_v24, %v311_v5  ;;  %v852_v7 = vpop.f32.mrb[14].mxu0  ;;  %877 = vmatprep.mubr.bf16.mxu1 %v420_v2 }
 0x145   :  { %v399_v8 = vadd.f32 %v852_v7, %v701_v24  ;;  %v314_v9 = vpop.f32.mrb[15].mxu0  ;;  %878 = vmatmul.mubr.bf16.gmra.mrb[8].mxu1 %v421_v1  ;;  %v414_v11 = vmax.f32 %v398_v4, 0.0 }
 0x146   :  { %v397_v10 = vadd.f32 %v701_v24, %v314_v9  ;;  %v412_v13 = vmax.f32 %v396_v6, 0.0 }
 0x147   :  { %v415_v12 = vmax.f32 %v399_v8, 0.0 }
 0x148   :  { %v413_v14 = vmax.f32 %v397_v10, 0.0 }
 0x149   :  { %v423_v15 = vpack.c.bf16 %v415_v12, %v414_v11 }
 0x14a   :  { %v422_v16 = vpack.c.bf16 %v413_v14, %v412_v13 }
 0x14c   :  { %881 = vmatprep.mubr.bf16.mxu1 %v422_v16 }
 0x14d   :  { %882 = vmatmul.mubr.bf16.gmra.mrb[12].mxu1 %v423_v15 }
 0x208   :  { %v871_v17 = vpop.f32.mrb[0].mxu1 }
 0x209   :  { %v522_v18 = vpop.f32.mrb[1].mxu1 }
 0x20a   :  { %v872_v19 = vpop.f32.mrb[2].mxu1 }
 0x20b   :  { %v750_v20 = vpack.c.bf16 %v872_v19, %v871_v17  ;;  %v525_v21 = vpop.f32.mrb[3].mxu1 }
 0x20c   :  { %v745_v22 = vpack.c.bf16 %v525_v21, %v522_v18 }
 0x20d   :  { %782 = vst [vmem:[#allocation9 + $0x8] sm:$0xff] %v750_v20  }
 0x20e   :  { %746 = vst [vmem:[#allocation9] sm:$0xff] %v745_v22  }
 0x210   :  { %v875_v23 = vpop.f32.mrb[4].mxu1 }
 0x211   :  { %v538_v25 = vpop.f32.mrb[5].mxu1 }
 0x212   :  { %v876_v26 = vpop.f32.mrb[6].mxu1 }
 0x213   :  { %v760_v24 = vpack.c.bf16 %v876_v26, %v875_v23  ;;  %v541_v27 = vpop.f32.mrb[7].mxu1 }
 0x214   :  { %v755_v28 = vpack.c.bf16 %v541_v27, %v538_v25 }
 0x215   :  { %784 = vst [vmem:[#allocation9 + $0x18] sm:$0xff] %v760_v24  }
 0x216   :  { %783 = vst [vmem:[#allocation9 + $0x10] sm:$0xff] %v755_v28  }
 0x218   :  { %v879_v29 = vpop.f32.mrb[8].mxu1 }
 0x219   :  { %v554_v30 = vpop.f32.mrb[9].mxu1 }
 0x21a   :  { %v880_v31 = vpop.f32.mrb[10].mxu1 }
 0x21b   :  { %v770_v32 = vpack.c.bf16 %v880_v31, %v879_v29  ;;  %v557_v33 = vpop.f32.mrb[11].mxu1 }
 0x21c   :  { %v765_v34 = vpack.c.bf16 %v557_v33, %v554_v30 }
 0x21d   :  { %786 = vst [vmem:[#allocation9 + $0x28] sm:$0xff] %v770_v32  }
 0x21e   :  { %785 = vst [vmem:[#allocation9 + $0x20] sm:$0xff] %v765_v34  }
 0x220   :  { %v883_v35 = vpop.f32.mrb[12].mxu1 }
 0x221   :  { %v570_v36 = vpop.f32.mrb[13].mxu1 }
 0x222   :  { %v884_v37 = vpop.f32.mrb[14].mxu1 }
 0x223   :  { %v780_v38 = vpack.c.bf16 %v884_v37, %v883_v35  ;;  %v573_v39 = vpop.f32.mrb[15].mxu1 }
 0x224   :  { %v775_v40 = vpack.c.bf16 %v573_v39, %v570_v36 }
 0x225   :  { %788 = vst [vmem:[#allocation9 + $0x38] sm:$0xff] %v780_v38  }
 0x226   :  { %787 = vst [vmem:[#allocation9 + $0x30] sm:$0xff] %v775_v40  }
 0x227   :  { %992 = shalt.err (!%p989_p0)
}
 0x228   :  { %s993_s6 = scalar_lea.hbm %s1114_s4, 1024 }
 0x229   :  { %p994_p1 = scmp.ne.s32.totalorder %s1114_s4, %s993_s6  ;;  %p997_p2 = scmp.lt.u32.totalorder %s993_s6, %s1114_s4 }
 0x22b   :  { %p999_p3 = pnand %p997_p2, %p994_p1 }
 0x22d   :  { %1002 = shalt.err (!%p999_p3)
}
 0x22e   :  { %676 = dma.vmem_to_hbm [thread:$0]  %s671_s26, 1024, %s1114_s4, [#allocation5], %s1011_s27, %s1011_s27, %s1012_s28  }
 0x22f   :  { %1007 = dma.done.wait [#allocation5], 1024  }
 0x230   :  { %1008 = vsyncadd [#allocation5], 4294966272 }
 0x231   :  { %680 = vsyncpa [#allocation4], 1 }
 0x232   :  { %681 = vsyncpa [#allocation7], 1 }
 0x233   :  { %682 = vsyncpa [#allocation5], 1 }

</bundles_post_ra>
